<compile_context>
chip_gen: v6e
topology: v6e:2x2x1
jax: 0.10.0
libtpu: 0.0.40
codegen_flags: <defaults>
</compile_context>

<pallas_src>
import jax
import jax.numpy as jnp
from jax.experimental import pallas as pl
from jax.experimental.pallas import tpu as pltpu

OUT_CLASSES = 10
OUT_PAD = 128          # in-register lane-dense width for the softmax
NEG_INF = -1e30        # pad-column bias -> exp() == 0 in the normalizer


def _mlp_kernel(x_ref, w1_ref, b1_ref, w2_ref, b2_ref,
                w3_ref, b3_ref, w4_ref, b4_ref, o_ref):
    cd = w1_ref.dtype                       # MXU compute dtype (bf16)
    # In-kernel cast of the streamed f32 tile (saves a wrapper convert pass).
    x = x_ref[...].astype(cd)
    # Layer 1: (TB,784) @ (784,256) + b, ReLU.  bf16 operands, f32 accumulate.
    h = jnp.dot(x, w1_ref[...], preferred_element_type=jnp.float32)
    h = jnp.maximum(h + b1_ref[...], 0.0)
    # Layer 2: (TB,256) @ (256,128) + b, ReLU
    h = jnp.dot(h.astype(cd), w2_ref[...], preferred_element_type=jnp.float32)
    h = jnp.maximum(h + b2_ref[...], 0.0)
    # Layer 3: (TB,128) @ (128,64) + b, ReLU
    h = jnp.dot(h.astype(cd), w3_ref[...], preferred_element_type=jnp.float32)
    h = jnp.maximum(h + b3_ref[...], 0.0)
    # Layer 4, lane-dense in-register: (TB,64) @ (64,128) + b (pad lanes -1e30)
    logits = jnp.dot(h.astype(cd), w4_ref[...],
                     preferred_element_type=jnp.float32)
    logits = logits + b4_ref[...]           # f32; pad lanes carry -1e30
    # Numerically stable log_softmax over the 128-lane vreg; pad lanes
    # contribute exp(-huge) == 0 to the normalizer.
    m = jnp.max(logits, axis=-1, keepdims=True)
    s = logits - m
    lse = jnp.log(jnp.sum(jnp.exp(s), axis=-1, keepdims=True))
    # Store only the 10 real classes: narrow writeback, no wrapper slice pass.
    o_ref[...] = (s - lse)[:, :OUT_CLASSES].astype(o_ref.dtype)


def _batch_semantics(num_steps):
    """CORE_PARALLEL on v7x (2 TensorCores/chip) so both cores split the batch
    grid; plain "parallel" elsewhere (measured no-op vs arbitrary on 1-TC chips,
    but harmless)."""
    try:
        kind = jax.devices()[0].device_kind.lower()
    except Exception:  # pragma: no cover - defensive, keep lowering portable
        kind = ""
    if num_steps >= 2 and "7" in kind:
        return (pltpu.CORE_PARALLEL,)
    return ("parallel",)


def classifier_forward(x_nchw, params, *, batch_tile=1024,
                       compute_dtype=jnp.bfloat16, out_dtype=jnp.float32):
    """Full MLP forward pass in a single batch-tiled Pallas kernel.

    x_nchw: (B, 1, 28, 28) float32, like the PyTorch NCHW input.
    params: dict with transposed weights w1..w4 (in,out) and biases b1..b4 (1,out).
    Returns (B, 10) `out_dtype` log-probabilities (f32 by default, matching torch;
    pass bf16 to halve writeback bytes if the consumer tolerates it).
    """
    B = x_nchw.shape[0]
    x = x_nchw.reshape(B, -1).astype(jnp.float32)   # == torch .view(B,-1); stays f32
    D_in = x.shape[1]

    # Batch tile: whole batch if it fits one tile (block dim == array dim is
    # always a legal block shape), else batch_tile rows (multiple of 8).
    if B <= batch_tile:
        TB = B
    else:
        TB = max(8, (batch_tile // 8) * 8)
    num_steps = pl.cdiv(B, TB)                      # partial last block is clamped

    # bf16 MXU operands (weights are tiny + VMEM-resident); f32 biases.
    w1 = params["w1"].astype(compute_dtype)
    w2 = params["w2"].astype(compute_dtype)
    w3 = params["w3"].astype(compute_dtype)
    b1 = params["b1"].astype(jnp.float32)
    b2 = params["b2"].astype(jnp.float32)
    b3 = params["b3"].astype(jnp.float32)
    # Final layer padded 10 -> 128 columns for a lane-dense in-register softmax.
    w4 = jnp.pad(params["w4"],
                 ((0, 0), (0, OUT_PAD - params["w4"].shape[1]))
                 ).astype(compute_dtype)
    # NOTE: b4 (and its -1e30 pad) must stay f32 - never cast to compute_dtype.
    b4 = jnp.pad(params["b4"].astype(jnp.float32),
                 ((0, 0), (0, OUT_PAD - params["b4"].shape[1])),
                 constant_values=NEG_INF)

    def resident(arr):
        # Constant block index across the batch grid => DMA'd once, stays
        # VMEM-resident for the whole kernel (no per-step re-fetch).
        return pl.BlockSpec(arr.shape, lambda i: (0, 0))

    out = pl.pallas_call(
        _mlp_kernel,
        out_shape=jax.ShapeDtypeStruct((B, OUT_CLASSES), out_dtype),
        grid=(num_steps,),
        in_specs=[
            pl.BlockSpec((TB, D_in), lambda i: (i, 0)),    # streamed f32 x tiles
            resident(w1), resident(b1),
            resident(w2), resident(b2),
            resident(w3), resident(b3),
            resident(w4), resident(b4),
        ],
        out_specs=pl.BlockSpec((TB, OUT_CLASSES), lambda i: (i, 0)),
        compiler_params=pltpu.CompilerParams(
            dimension_semantics=_batch_semantics(num_steps)),
    )(x, w1, b1, w2, b2, w3, b3, w4, b4)

    return out


def init_params(key):
    """Deterministic init mirroring nn.Linear default (uniform +-1/sqrt(fan_in)).

    Weights stored transposed: (in_features, out_features)."""
    dims = [(784, 256), (256, 128), (128, 64), (64, 10)]
    params = {}
    for i, (fan_in, fan_out) in enumerate(dims, start=1):
        key, kw, kb = jax.random.split(key, 3)
        bound = 1.0 / jnp.sqrt(fan_in)
        params[f"w{i}"] = jax.random.uniform(
            kw, (fan_in, fan_out), jnp.float32, -bound, bound)
        params[f"b{i}"] = jax.random.uniform(
            kb, (1, fan_out), jnp.float32, -bound, bound)
    return params


def _reference_forward(x_nchw, params, compute_dtype=jnp.float32):
    """Pure-JAX reference; compute_dtype matches the kernel's matmul operands."""
    x = x_nchw.reshape(x_nchw.shape[0], -1)

    def layer(h, w, b, act):
        y = jnp.dot(h.astype(compute_dtype), w.astype(compute_dtype),
                    preferred_element_type=jnp.float32) + b
        return jnp.maximum(y, 0.0) if act else y

    h = layer(x, params["w1"], params["b1"], True)
    h = layer(h, params["w2"], params["b2"], True)
    h = layer(h, params["w3"], params["b3"], True)
    logits = layer(h, params["w4"], params["b4"], False)
    return jax.nn.log_softmax(logits, axis=1)


if __name__ == "__main__":
    key = jax.random.PRNGKey(0)
    key, kx1, kx2 = jax.random.split(key, 3)
    params = init_params(key)

    # Small Fashion-MNIST-like batch: NCHW (B=8, C=1, H=28, W=28).
    x = jax.random.normal(kx1, (8, 1, 28, 28), dtype=jnp.float32)
    out = jax.block_until_ready(classifier_forward(x, params))
    assert out.shape == (8, OUT_CLASSES)

    ref_bf16 = _reference_forward(x, params, compute_dtype=jnp.bfloat16)
    ref_f32 = _reference_forward(x, params, compute_dtype=jnp.float32)
    assert jnp.allclose(out, ref_bf16, atol=1e-3, rtol=1e-3)
    assert jnp.allclose(out, ref_f32, atol=1e-1, rtol=1e-1)
    assert jnp.allclose(jnp.sum(jnp.exp(out), axis=1), 1.0, atol=1e-3)

    # Multi-step grid with a partial (clamped) last block: B=20, TB=8 -> 3 steps.
    x2 = jax.random.normal(kx2, (20, 1, 28, 28), dtype=jnp.float32)
    out2 = jax.block_until_ready(classifier_forward(x2, params, batch_tile=8))
    ref2 = _reference_forward(x2, params, compute_dtype=jnp.bfloat16)
    assert out2.shape == (20, OUT_CLASSES)
    assert jnp.allclose(out2, ref2, atol=1e-3, rtol=1e-3)
    assert jnp.allclose(jnp.sum(jnp.exp(out2), axis=1), 1.0, atol=1e-3)

    print("KERNEL_OK")
</pallas_src>

<mosaic_0001>
module attributes {stable_mosaic.version = 11 : i64} {
  func.func @_mlp_kernel(%arg0: i32, %arg1: memref<8x784xf32, #tpu.memory_space<vmem>>, %arg2: memref<784x256xbf16, #tpu.memory_space<vmem>>, %arg3: memref<1x256xf32, #tpu.memory_space<vmem>>, %arg4: memref<256x128xbf16, #tpu.memory_space<vmem>>, %arg5: memref<1x128xf32, #tpu.memory_space<vmem>>, %arg6: memref<128x64xbf16, #tpu.memory_space<vmem>>, %arg7: memref<1x64xf32, #tpu.memory_space<vmem>>, %arg8: memref<64x128xbf16, #tpu.memory_space<vmem>>, %arg9: memref<1x128xf32, #tpu.memory_space<vmem>>, %arg10: memref<8x10xf32, #tpu.memory_space<vmem>>) attributes {dimension_semantics = [#tpu.dimension_semantics<parallel>], iteration_bounds = array<i64: 1>, scalar_prefetch = 0 : i64, scratch_operands = 0 : i64, tpu.core_type = #tpu.core_type<tc>, window_params = [{transform_indices = @transform_0, window_bounds = array<i64: 8, 784>}, {pipeline_mode = #tpu.pipeline_mode<synchronous>, transform_indices = @transform_1, window_bounds = array<i64: 784, 256>}, {pipeline_mode = #tpu.pipeline_mode<synchronous>, transform_indices = @transform_2, window_bounds = array<i64: 1, 256>}, {pipeline_mode = #tpu.pipeline_mode<synchronous>, transform_indices = @transform_3, window_bounds = array<i64: 256, 128>}, {pipeline_mode = #tpu.pipeline_mode<synchronous>, transform_indices = @transform_4, window_bounds = array<i64: 1, 128>}, {pipeline_mode = #tpu.pipeline_mode<synchronous>, transform_indices = @transform_5, window_bounds = array<i64: 128, 64>}, {pipeline_mode = #tpu.pipeline_mode<synchronous>, transform_indices = @transform_6, window_bounds = array<i64: 1, 64>}, {pipeline_mode = #tpu.pipeline_mode<synchronous>, transform_indices = @transform_7, window_bounds = array<i64: 64, 128>}, {pipeline_mode = #tpu.pipeline_mode<synchronous>, transform_indices = @transform_8, window_bounds = array<i64: 1, 128>}, {transform_indices = @transform_9, window_bounds = array<i64: 8, 10>}]} {
    %c0 = arith.constant 0 : index
    %c0_0 = arith.constant 0 : index
    %0 = vector.load %arg1[%c0, %c0_0] : memref<8x784xf32, #tpu.memory_space<vmem>>, vector<8x784xf32>
    %1 = arith.truncf %0 : vector<8x784xf32> to vector<8x784xbf16>
    %c0_1 = arith.constant 0 : index
    %c0_2 = arith.constant 0 : index
    %2 = vector.load %arg2[%c0_1, %c0_2] : memref<784x256xbf16, #tpu.memory_space<vmem>>, vector<784x256xbf16>
    %cst = arith.constant dense<0.000000e+00> : vector<8x256xf32>
    %3 = tpu.matmul %1, %2, %cst {dimension_numbers = #tpu.dot_dimension_numbers<[1], [0], [0], [1], [0, 0, 1, 1], [], []>} : vector<8x784xbf16>, vector<784x256xbf16>, vector<8x256xf32> -> vector<8x256xf32>
    %c0_3 = arith.constant 0 : index
    %c0_4 = arith.constant 0 : index
    %4 = vector.load %arg3[%c0_3, %c0_4] : memref<1x256xf32, #tpu.memory_space<vmem>>, vector<1x256xf32>
    %5 = vector.broadcast %4 : vector<1x256xf32> to vector<8x256xf32>
    %6 = arith.addf %3, %5 : vector<8x256xf32>
    %cst_5 = arith.constant 0.000000e+00 : f32
    %7 = vector.broadcast %cst_5 : f32 to vector<8x256xf32>
    %8 = arith.maximumf %6, %7 : vector<8x256xf32>
    %9 = arith.truncf %8 : vector<8x256xf32> to vector<8x256xbf16>
    %c0_6 = arith.constant 0 : index
    %c0_7 = arith.constant 0 : index
    %10 = vector.load %arg4[%c0_6, %c0_7] : memref<256x128xbf16, #tpu.memory_space<vmem>>, vector<256x128xbf16>
    %cst_8 = arith.constant dense<0.000000e+00> : vector<8x128xf32>
    %11 = tpu.matmul %9, %10, %cst_8 {dimension_numbers = #tpu.dot_dimension_numbers<[1], [0], [0], [1], [0, 0, 1, 1], [], []>} : vector<8x256xbf16>, vector<256x128xbf16>, vector<8x128xf32> -> vector<8x128xf32>
    %c0_9 = arith.constant 0 : index
    %c0_10 = arith.constant 0 : index
    %12 = vector.load %arg5[%c0_9, %c0_10] : memref<1x128xf32, #tpu.memory_space<vmem>>, vector<1x128xf32>
    %13 = vector.broadcast %12 : vector<1x128xf32> to vector<8x128xf32>
    %14 = arith.addf %11, %13 : vector<8x128xf32>
    %cst_11 = arith.constant 0.000000e+00 : f32
    %15 = vector.broadcast %cst_11 : f32 to vector<8x128xf32>
    %16 = arith.maximumf %14, %15 : vector<8x128xf32>
    %17 = arith.truncf %16 : vector<8x128xf32> to vector<8x128xbf16>
    %c0_12 = arith.constant 0 : index
    %c0_13 = arith.constant 0 : index
    %18 = vector.load %arg6[%c0_12, %c0_13] : memref<128x64xbf16, #tpu.memory_space<vmem>>, vector<128x64xbf16>
    %cst_14 = arith.constant dense<0.000000e+00> : vector<8x64xf32>
    %19 = tpu.matmul %17, %18, %cst_14 {dimension_numbers = #tpu.dot_dimension_numbers<[1], [0], [0], [1], [0, 0, 1, 1], [], []>} : vector<8x128xbf16>, vector<128x64xbf16>, vector<8x64xf32> -> vector<8x64xf32>
    %c0_15 = arith.constant 0 : index
    %c0_16 = arith.constant 0 : index
    %20 = vector.load %arg7[%c0_15, %c0_16] : memref<1x64xf32, #tpu.memory_space<vmem>>, vector<1x64xf32>
    %21 = vector.broadcast %20 : vector<1x64xf32> to vector<8x64xf32>
    %22 = arith.addf %19, %21 : vector<8x64xf32>
    %cst_17 = arith.constant 0.000000e+00 : f32
    %23 = vector.broadcast %cst_17 : f32 to vector<8x64xf32>
    %24 = arith.maximumf %22, %23 : vector<8x64xf32>
    %25 = arith.truncf %24 : vector<8x64xf32> to vector<8x64xbf16>
    %c0_18 = arith.constant 0 : index
    %c0_19 = arith.constant 0 : index
    %26 = vector.load %arg8[%c0_18, %c0_19] : memref<64x128xbf16, #tpu.memory_space<vmem>>, vector<64x128xbf16>
    %cst_20 = arith.constant dense<0.000000e+00> : vector<8x128xf32>
    %27 = tpu.matmul %25, %26, %cst_20 {dimension_numbers = #tpu.dot_dimension_numbers<[1], [0], [0], [1], [0, 0, 1, 1], [], []>} : vector<8x64xbf16>, vector<64x128xbf16>, vector<8x128xf32> -> vector<8x128xf32>
    %c0_21 = arith.constant 0 : index
    %c0_22 = arith.constant 0 : index
    %28 = vector.load %arg9[%c0_21, %c0_22] : memref<1x128xf32, #tpu.memory_space<vmem>>, vector<1x128xf32>
    %29 = vector.broadcast %28 : vector<1x128xf32> to vector<8x128xf32>
    %30 = arith.addf %27, %29 : vector<8x128xf32>
    %cst_23 = arith.constant dense<0xFF800000> : vector<8xf32>
    %31 = vector.multi_reduction <maximumf>, %30, %cst_23 [1] : vector<8x128xf32> to vector<8xf32>
    %32 = vector.shape_cast %31 : vector<8xf32> to vector<8x1xf32>
    %33 = vector.broadcast %32 : vector<8x1xf32> to vector<8x128xf32>
    %34 = arith.subf %30, %33 : vector<8x128xf32>
    %35 = math.exp %34 : vector<8x128xf32>
    %cst_24 = arith.constant dense<0.000000e+00> : vector<8xf32>
    %36 = vector.multi_reduction <add>, %35, %cst_24 [1] : vector<8x128xf32> to vector<8xf32>
    %37 = vector.shape_cast %36 : vector<8xf32> to vector<8x1xf32>
    %38 = math.log %37 : vector<8x1xf32>
    %39 = vector.broadcast %38 : vector<8x1xf32> to vector<8x128xf32>
    %40 = arith.subf %34, %39 : vector<8x128xf32>
    %41 = vector.extract_strided_slice %40 {offsets = [0, 0], sizes = [8, 10], strides = [1, 1]} : vector<8x128xf32> to vector<8x10xf32>
    %c0_25 = arith.constant 0 : index
    %c0_26 = arith.constant 0 : index
    %42 = vector.load %arg10[%c0_25, %c0_26] : memref<8x10xf32, #tpu.memory_space<vmem>>, vector<8x10xf32>
    tpu.vector_store %arg10[%c0_25, %c0_26], %41 {strides = array<i32>} : memref<8x10xf32, #tpu.memory_space<vmem>>, vector<8x10xf32>,
    return
  }
  func.func @transform_0(%arg0: i32) -> (i32, i32) {
    %c0_i32 = arith.constant 0 : i32
    %c0_i32_0 = arith.constant 0 : i32
    return %arg0, %c0_i32 : i32, i32
  }
  func.func @transform_1(%arg0: i32) -> (i32, i32) {
    %c0_i32 = arith.constant 0 : i32
    %c0_i32_0 = arith.constant 0 : i32
    %c0_i32_1 = arith.constant 0 : i32
    return %c0_i32, %c0_i32_0 : i32, i32
  }
  func.func @transform_2(%arg0: i32) -> (i32, i32) {
    %c0_i32 = arith.constant 0 : i32
    %c0_i32_0 = arith.constant 0 : i32
    %c0_i32_1 = arith.constant 0 : i32
    return %c0_i32, %c0_i32_0 : i32, i32
  }
  func.func @transform_3(%arg0: i32) -> (i32, i32) {
    %c0_i32 = arith.constant 0 : i32
    %c0_i32_0 = arith.constant 0 : i32
    %c0_i32_1 = arith.constant 0 : i32
    return %c0_i32, %c0_i32_0 : i32, i32
  }
  func.func @transform_4(%arg0: i32) -> (i32, i32) {
    %c0_i32 = arith.constant 0 : i32
    %c0_i32_0 = arith.constant 0 : i32
    %c0_i32_1 = arith.constant 0 : i32
    return %c0_i32, %c0_i32_0 : i32, i32
  }
  func.func @transform_5(%arg0: i32) -> (i32, i32) {
    %c0_i32 = arith.constant 0 : i32
    %c0_i32_0 = arith.constant 0 : i32
    %c0_i32_1 = arith.constant 0 : i32
    return %c0_i32, %c0_i32_0 : i32, i32
  }
  func.func @transform_6(%arg0: i32) -> (i32, i32) {
    %c0_i32 = arith.constant 0 : i32
    %c0_i32_0 = arith.constant 0 : i32
    %c0_i32_1 = arith.constant 0 : i32
    return %c0_i32, %c0_i32_0 : i32, i32
  }
  func.func @transform_7(%arg0: i32) -> (i32, i32) {
    %c0_i32 = arith.constant 0 : i32
    %c0_i32_0 = arith.constant 0 : i32
    %c0_i32_1 = arith.constant 0 : i32
    return %c0_i32, %c0_i32_0 : i32, i32
  }
  func.func @transform_8(%arg0: i32) -> (i32, i32) {
    %c0_i32 = arith.constant 0 : i32
    %c0_i32_0 = arith.constant 0 : i32
    %c0_i32_1 = arith.constant 0 : i32
    return %c0_i32, %c0_i32_0 : i32, i32
  }
  func.func @transform_9(%arg0: i32) -> (i32, i32) {
    %c0_i32 = arith.constant 0 : i32
    %c0_i32_0 = arith.constant 0 : i32
    return %arg0, %c0_i32 : i32, i32
  }
}

</mosaic_0001>

<bundles_post_ra>
// kernel: tpu_custom_call.1
= control target key start
LH: loop header
LB: loop body
LE: loop exit
PB: predicated region body
PF: predicated region fallthrough
CT: control target
= control target key end

     0   :  { %14 = vsyncpa [#allocation3], 0  ;;  %s1856_s0 = inlined_call_operand.vmem [shape: f32[8,784], index: 0, kind: input, shape index: {}]   ;;  %s1857_s1 = inlined_call_operand.hbm [shape: bf16[784,256], index: 1, kind: input, shape index: {}]   ;;  %s1858_s2 = inlined_call_operand.vmem [shape: f32[1,256], index: 2, kind: input, shape index: {}]   ;;  %s1859_s3 = inlined_call_operand.hbm [shape: bf16[256,128], index: 3, kind: input, shape index: {}]   ;;  %s1860_s4 = inlined_call_operand.vmem [shape: f32[1,128], index: 4, kind: input, shape index: {}]   ;;  %s1861_s5 = inlined_call_operand.vmem [shape: bf16[128,64], index: 5, kind: input, shape index: {}]   ;;  %s1862_s6 = inlined_call_operand.vmem [shape: f32[1,64], index: 6, kind: input, shape index: {}]   ;;  %s1863_s7 = inlined_call_operand.vmem [shape: bf16[64,128], index: 7, kind: input, shape index: {}]   ;;  %s1864_s8 = inlined_call_operand.vmem [shape: f32[1,128], index: 8, kind: input, shape index: {}]   ;;  %s1865_s9 = inlined_call_operand.hbm [shape: f32[8,10], index: 9, kind: output, shape index: {}]  }
   0x1   :  { %15 = vsyncpa [#allocation6], 0 }
   0x2   :  { %16 = vsyncpa [#allocation4], 0  ;;  %s1703_s30 = smov [#allocation2]  }
   0x3   :  { %s24_s10 = sshll.u32 %s1703_s30, 4  ;;  %s25_s10 = int_to_ptr.vmem [resolvable:$true] %s24_s10 }
   0x4   :  { %s1645_s11 = scalar_lea.vmem %s25_s10, 12544  ;;  %p1650_p1 = scmp.lt.s32.totalorder %s25_s10, %s25_s10 }
   0x5   :  { %p1646_p0 = scmp.ne.s32.totalorder %s25_s10, %s1645_s11  ;;  %p1651_p2 = scmp.lt.s32.totalorder %s1645_s11, %s1645_s11 }
   0x7   :  { %p1652_p3 = por %p1651_p2, %p1650_p1 }
   0x9   :  { %p1653_p4 = pnand %p1652_p3, %p1646_p0 }
   0xb   :  { %1656 = shalt.err (!%p1653_p4)
}
   0xc   :  { %s1704_s12 = smov 128   ;;  %s1705_s13 = smov 8  }
   0xd   :  { %30 = dma.hbm_to_vmem [thread:$0]  %s1857_s1, 12544, %s25_s10, [#allocation3], %s1704_s12, %s1704_s12, %s1705_s13  }
   0xe   :  { %s1706_s16 = smov [#allocation5]  }
   0xf   :  { %s38_s17 = sshll.u32 %s1706_s16, 4  ;;  %s39_s17 = int_to_ptr.vmem [resolvable:$true] %s38_s17 }
  0x10   :  { %s1665_s18 = scalar_lea.vmem %s39_s17, 2048  ;;  %p1670_p6 = scmp.lt.s32.totalorder %s39_s17, %s39_s17 }
  0x11   :  { %p1666_p5 = scmp.ne.s32.totalorder %s39_s17, %s1665_s18  ;;  %p1671_p7 = scmp.lt.s32.totalorder %s1665_s18, %s1665_s18 }
  0x13   :  { %p1672_p8 = por %p1671_p7, %p1670_p6 }
  0x15   :  { %p1673_p9 = pnand %p1672_p8, %p1666_p5 }
  0x17   :  { %1676 = shalt.err (!%p1673_p9)
}
  0x18   :  { %s1707_s19 = smov 64   ;;  %s1708_s20 = smov 4  }
  0x19   :  { %44 = dma.hbm_to_vmem [thread:$0]  %s1859_s3, 2048, %s39_s17, [#allocation6], %s1707_s19, %s1707_s19, %s1708_s20  }
  0x1a   :  { %1697 = dma.done.wait [#allocation3], 12544  }
  0x1b   :  { %1698 = vsyncadd [#allocation3], 4294954752 }
  0x1c   :  { %1699 = dma.done.wait [#allocation6], 2048  }
  0x1d   :  { %1700 = vsyncadd [#allocation6], 4294965248  ;;  %v1458_v0 = vld [vmem:[#allocation2 + $0x74] ss:$8 sps:$4 sm:$0xff]   ;;  %v1460_v1 = vld [vmem:[#allocation2 + $0x70] ss:$8 sps:$4 sm:$0xff]  }
  0x1e   :  { %680 = vmatprep.subr.bf16.mxu0 %v1458_v0  ;;  %v1461_v2 = vld [vmem:[#allocation2 + $0x174] ss:$8 sps:$4 sm:$0xff]   ;;  %v1463_v3 = vld [vmem:[#allocation2 + $0x170] ss:$8 sps:$4 sm:$0xff]   ;;  %v1464_v4 = vld [vmem:[#allocation2 + $0x64] ss:$8 sps:$4 sm:$0xff]  }
  0x1f   :  { %681 = vmatpush1.bf16.msra.mxu0 %v1460_v1  ;;  %v1466_v5 = vld [vmem:[#allocation2 + $0x60] ss:$8 sps:$4 sm:$0xff]   ;;  %721 = vmatprep.subr.bf16.mxu1 %v1461_v2  ;;  %v1467_v6 = vld [vmem:[#allocation2 + $0x164] ss:$8 sps:$4 sm:$0xff]   ;;  %v1470_v8 = vld [vmem:[#allocation2 + $0x54] ss:$8 sps:$4 sm:$0xff]  }
  0x20   :  { %722 = vmatpush1.bf16.msra.mxu1 %v1463_v3  ;;  %682 = vmatprep.subr.bf16.mxu0 %v1464_v4  ;;  %v1469_v7 = vld [vmem:[#allocation2 + $0x160] ss:$8 sps:$4 sm:$0xff]   ;;  %v1472_v9 = vld [vmem:[#allocation2 + $0x50] ss:$8 sps:$4 sm:$0xff]   ;;  %v1473_v10 = vld [vmem:[#allocation2 + $0x154] ss:$8 sps:$4 sm:$0xff]  }
  0x21   :  { %723 = vmatprep.subr.bf16.mxu1 %v1467_v6  ;;  %v1476_v11 = vld [vmem:[#allocation2 + $0x44] ss:$8 sps:$4 sm:$0xff]   ;;  %v1475_v12 = vld [vmem:[#allocation2 + $0x150] ss:$8 sps:$4 sm:$0xff]   ;;  %v1478_v14 = vld [vmem:[#allocation2 + $0x40] ss:$8 sps:$4 sm:$0xff]  }
  0x22   :  { %v1479_v13 = vld [vmem:[#allocation2 + $0x144] ss:$8 sps:$4 sm:$0xff]   ;;  %v1482_v15 = vld [vmem:[#allocation2 + $0x34] ss:$8 sps:$4 sm:$0xff]   ;;  %v1481_v16 = vld [vmem:[#allocation2 + $0x140] ss:$8 sps:$4 sm:$0xff]  }
  0x23   :  { %683 = vmatpush1.bf16.msra.mxu0 %v1466_v5  ;;  %v1485_v17 = vld [vmem:[#allocation2 + $0x134] ss:$8 sps:$4 sm:$0xff]   ;;  %v1484_v18 = vld [vmem:[#allocation2 + $0x30] ss:$8 sps:$4 sm:$0xff]   ;;  %v1488_v19 = vld [vmem:[#allocation2 + $0x24] ss:$8 sps:$4 sm:$0xff]  }
  0x24   :  { %684 = vmatprep.subr.bf16.mxu0 %v1470_v8  ;;  %724 = vmatpush1.bf16.msra.mxu1 %v1469_v7  ;;  %v1487_v20 = vld [vmem:[#allocation2 + $0x130] ss:$8 sps:$4 sm:$0xff]   ;;  %v1491_v21 = vld [vmem:[#allocation2 + $0x124] ss:$8 sps:$4 sm:$0xff]   ;;  %v1490_v22 = vld [vmem:[#allocation2 + $0x20] ss:$8 sps:$4 sm:$0xff]  }
  0x25   :  { %725 = vmatprep.subr.bf16.mxu1 %v1473_v10  ;;  %v1494_v23 = vld [vmem:[#allocation2 + $0x14] ss:$8 sps:$4 sm:$0xff]   ;;  %v1493_v24 = vld [vmem:[#allocation2 + $0x120] ss:$8 sps:$4 sm:$0xff]   ;;  %v1496_v26 = vld [vmem:[#allocation2 + $0x10] ss:$8 sps:$4 sm:$0xff]  }
  0x26   :  { %v1497_v25 = vld [vmem:[#allocation2 + $0x114] ss:$8 sps:$4 sm:$0xff]   ;;  %v1500_v27 = vld [vmem:[#allocation2 + $0x4] ss:$8 sps:$4 sm:$0xff]   ;;  %v1499_v28 = vld [vmem:[#allocation2 + $0x110] ss:$8 sps:$4 sm:$0xff]  }
  0x27   :  { %685 = vmatpush1.bf16.msra.mxu0 %v1472_v9  ;;  %v1503_v29 = vld [vmem:[#allocation2 + $0x104] ss:$8 sps:$4 sm:$0xff]   ;;  %v1502_v30 = vld [vmem:[#allocation2] ss:$8 sps:$4 sm:$0xff]   ;;  %v1506_v31 = vld [vmem:[#allocation2 + $0xf4] ss:$8 sps:$4 sm:$0xff]  }
  0x28   :  { %686 = vmatprep.subr.bf16.mxu0 %v1476_v11  ;;  %726 = vmatpush1.bf16.msra.mxu1 %v1475_v12  ;;  %v1505_v32 = vld [vmem:[#allocation2 + $0x100] ss:$8 sps:$4 sm:$0xff]   ;;  %v1509_v33 = vld [vmem:[#allocation2 + $0x1f4] ss:$8 sps:$4 sm:$0xff]   ;;  %v1508_v34 = vld [vmem:[#allocation2 + $0xf0] ss:$8 sps:$4 sm:$0xff]  }
  0x29   :  { %727 = vmatprep.subr.bf16.mxu1 %v1479_v13  ;;  %v1512_v35 = vld [vmem:[#allocation2 + $0xe4] ss:$8 sps:$4 sm:$0xff]   ;;  %v1511_v36 = vld [vmem:[#allocation2 + $0x1f0] ss:$8 sps:$4 sm:$0xff]   ;;  %v1514_v38 = vld [vmem:[#allocation2 + $0xe0] ss:$8 sps:$4 sm:$0xff]  }
  0x2a   :  { %v1515_v37 = vld [vmem:[#allocation2 + $0x1e4] ss:$8 sps:$4 sm:$0xff]   ;;  %v1518_v39 = vld [vmem:[#allocation2 + $0xd4] ss:$8 sps:$4 sm:$0xff]   ;;  %v1517_v40 = vld [vmem:[#allocation2 + $0x1e0] ss:$8 sps:$4 sm:$0xff]  }
  0x2b   :  { %687 = vmatpush1.bf16.msra.mxu0 %v1478_v14  ;;  %v1521_v41 = vld [vmem:[#allocation2 + $0x1d4] ss:$8 sps:$4 sm:$0xff]   ;;  %v1520_v42 = vld [vmem:[#allocation2 + $0xd0] ss:$8 sps:$4 sm:$0xff]   ;;  %v1524_v43 = vld [vmem:[#allocation2 + $0xc4] ss:$8 sps:$4 sm:$0xff]  }
  0x2c   :  { %688 = vmatprep.subr.bf16.mxu0 %v1482_v15  ;;  %728 = vmatpush1.bf16.msra.mxu1 %v1481_v16  ;;  %v1523_v44 = vld [vmem:[#allocation2 + $0x1d0] ss:$8 sps:$4 sm:$0xff]   ;;  %v1527_v45 = vld [vmem:[#allocation2 + $0x1c4] ss:$8 sps:$4 sm:$0xff]   ;;  %v1526_v47 = vld [vmem:[#allocation2 + $0xc0] ss:$8 sps:$4 sm:$0xff]  }
  0x2d   :  { %729 = vmatprep.subr.bf16.mxu1 %v1485_v17  ;;  %v63_v46 = vld [vmem:[%s1856_s0 + $0x8] sm:$0xff]  ;;  %v1530_v49 = vld [vmem:[#allocation2 + $0xb4] ss:$8 sps:$4 sm:$0xff]   ;;  %v1532_v54 = vld [vmem:[#allocation2 + $0xb0] ss:$8 sps:$4 sm:$0xff]   ;;  %vm676_vm0 = vcmask 130048  }
  0x2e   :  { %v70_v48 = vpack.c.bf16 %v63_v46, %v63_v46  ;;  %v65_v50 = vld [vmem:[%s1856_s0 + $0x18] sm:$0xff]  ;;  %v1529_v51 = vld [vmem:[#allocation2 + $0x1c0] ss:$8 sps:$4 sm:$0xff]   ;;  %v1536_v55 = vld [vmem:[#allocation2 + $0xa4] ss:$8 sps:$4 sm:$0xff]   ;;  %vm1711_vm1 = vmmov 0  }
  0x2f   :  { %689 = vmatpush1.bf16.msra.mxu0 %v1484_v18  ;;  %v72_v52 = vpack.c.bf16 %v65_v50, %v65_v50  ;;  %v1533_v53 = vld [vmem:[#allocation2 + $0x1b4] ss:$8 sps:$4 sm:$0xff]   ;;  %v1535_v56 = vld [vmem:[#allocation2 + $0x1b0] ss:$8 sps:$4 sm:$0xff]   ;;  %v1539_v57 = vld [vmem:[#allocation2 + $0x1a4] ss:$8 sps:$4 sm:$0xff]  }
  0x30   :  { %690 = vmatprep.subr.bf16.mxu0 %v1488_v19  ;;  %730 = vmatpush1.bf16.msra.mxu1 %v1487_v20  ;;  %v1538_v58 = vld [vmem:[#allocation2 + $0xa0] ss:$8 sps:$4 sm:$0xff]   ;;  %v1542_v59 = vld [vmem:[#allocation2 + $0x94] ss:$8 sps:$4 sm:$0xff]   ;;  %v1544_v62 = vld [vmem:[#allocation2 + $0x90] ss:$8 sps:$4 sm:$0xff]  }
  0x31   :  { %731 = vmatprep.subr.bf16.mxu1 %v1491_v21  ;;  %712 = vmatprep.mubr.bf16.mxu0 %v70_v48  ;;  %v1541_v60 = vld [vmem:[#allocation2 + $0x1a0] ss:$8 sps:$4 sm:$0xff]   ;;  %v1545_v61 = vld [vmem:[#allocation2 + $0x194] ss:$8 sps:$4 sm:$0xff]   ;;  %v1548_v63 = vld [vmem:[#allocation2 + $0x84] ss:$8 sps:$4 sm:$0xff]  }
  0x32   :  { %753 = vmatprep.mubr.bf16.mxu1 %v72_v52  ;;  %v1547_v0 = vld [vmem:[#allocation2 + $0x190] ss:$8 sps:$4 sm:$0xff]   ;;  %v1550_v1 = vld [vmem:[#allocation2 + $0x80] ss:$8 sps:$4 sm:$0xff]   ;;  %v1551_v2 = vld [vmem:[#allocation2 + $0x184] ss:$8 sps:$4 sm:$0xff]  }
  0x33   :  { %691 = vmatpush1.bf16.msra.mxu0 %v1490_v22  ;;  %v1553_v3 = vld [vmem:[#allocation2 + $0x180] ss:$8 sps:$4 sm:$0xff]   ;;  %v1556_v5 = vld [vmem:[#allocation2 + $0x274] ss:$8 sps:$4 sm:$0xff]   ;;  %v1554_v8 = vld [vmem:[#allocation2 + $0x270] ss:$8 sps:$4 sm:$0xff]  }
  0x34   :  { %692 = vmatprep.subr.bf16.mxu0 %v1494_v23  ;;  %732 = vmatpush1.bf16.msra.mxu1 %v1493_v24  ;;  %v62_v4 = vld [vmem:[%s1856_s0] sm:$0xff]  ;;  %v64_v6 = vld [vmem:[%s1856_s0 + $0x10] sm:$0xff]  ;;  %v67_v16 = vld [vmem:[%s1856_s0 + $0x28] sm:$0xff]  ;;  %v1709_v19 = vmov 0   ;;  %vm1177_vm2 = vcmask 523264   ;;  %vm1231_vm3 = vcmask 80896  }
  0x35   :  { %733 = vmatprep.subr.bf16.mxu1 %v1497_v25  ;;  %v69_v7 = vpack.c.bf16 %v62_v4, %v62_v4  ;;  %v1559_v9 = vld [vmem:[#allocation2 + $0x264] ss:$8 sps:$4 sm:$0xff]   ;;  %v71_v10 = vpack.c.bf16 %v64_v6, %v64_v6  ;;  %v1599_v11 = vld [vmem:[#allocation2 + $0x300] ss:$8 sps:$4 sm:$0xff]   ;;  %v1562_v14 = vld [vmem:[#allocation2 + $0x254] ss:$8 sps:$4 sm:$0xff]   ;;  %v74_v17 = vpack.c.bf16 %v67_v16, %v67_v16 }
  0x36   :  { %v1601_v12 = vld [vmem:[#allocation2 + $0x304] ss:$8 sps:$4 sm:$0xff]   ;;  %v1557_v13 = vld [vmem:[#allocation2 + $0x260] ss:$8 sps:$4 sm:$0xff]   ;;  %v68_v15 = vld [vmem:[%s1856_s0 + $0x30] sm:$0xff] }
  0x37   :  { %693 = vmatpush1.bf16.msra.mxu0 %v1496_v26  ;;  %v1560_v18 = vld [vmem:[#allocation2 + $0x250] ss:$8 sps:$4 sm:$0xff]   ;;  %v1565_v20 = vld [vmem:[#allocation2 + $0x244] ss:$8 sps:$4 sm:$0xff]   ;;  %v75_v21 = vpack.c.bf16 %v68_v15, %v68_v15  ;;  %v1563_v22 = vld [vmem:[#allocation2 + $0x240] ss:$8 sps:$4 sm:$0xff]  }
  0x38   :  { %694 = vmatprep.subr.bf16.mxu0 %v1500_v27  ;;  %734 = vmatpush1.bf16.msra.mxu1 %v1499_v28  ;;  %v1568_v23 = vld [vmem:[#allocation2 + $0x234] ss:$8 sps:$4 sm:$0xff]   ;;  %v1566_v24 = vld [vmem:[#allocation2 + $0x230] ss:$8 sps:$4 sm:$0xff]   ;;  %v1571_v25 = vld [vmem:[#allocation2 + $0x224] ss:$8 sps:$4 sm:$0xff]  }
  0x39   :  { %735 = vmatprep.subr.bf16.mxu1 %v1503_v29  ;;  %v1569_v26 = vld [vmem:[#allocation2 + $0x220] ss:$8 sps:$4 sm:$0xff]   ;;  %v1574_v27 = vld [vmem:[#allocation2 + $0x214] ss:$8 sps:$4 sm:$0xff]   ;;  %v1572_v28 = vld [vmem:[#allocation2 + $0x210] ss:$8 sps:$4 sm:$0xff]  }
  0x3a   :  { %v1577_v29 = vld [vmem:[#allocation2 + $0x204] ss:$8 sps:$4 sm:$0xff]   ;;  %v1602_v46 = vld [vmem:[#allocation2 + $0x280] ss:$8 sps:$4 sm:$0xff]  }
  0x3b   :  { %695 = vmatpush1.bf16.msra.mxu0 %v1502_v30  ;;  %v1575_v30 = vld [vmem:[#allocation2 + $0x200] ss:$8 sps:$4 sm:$0xff]  }
  0x3c   :  { %696 = vmatprep.subr.bf16.mxu0 %v1506_v31  ;;  %736 = vmatpush1.bf16.msra.mxu1 %v1505_v32  ;;  %v1580_v31 = vld [vmem:[#allocation2 + $0x2f4] ss:$8 sps:$4 sm:$0xff]   ;;  %v1578_v32 = vld [vmem:[#allocation2 + $0x2f0] ss:$8 sps:$4 sm:$0xff]   ;;  %v1606_v50 = vld [vmem:[#allocation5 + $0x38] sm:$0xff]  }
  0x3d   :  { %737 = vmatprep.subr.bf16.mxu1 %v1509_v33  ;;  %v1583_v33 = vld [vmem:[#allocation2 + $0x2e4] ss:$8 sps:$4 sm:$0xff]  }
  0x3e   :  { %v1608_v52 = vld [vmem:[#allocation5 + $0x30] sm:$0xff]  }
  0x3f   :  { %697 = vmatpush2.bf16.msra.mxu0 %v1508_v34  ;;  %v1581_v34 = vld [vmem:[#allocation2 + $0x2e0] ss:$8 sps:$4 sm:$0xff]  }
  0x40   :  { %698 = vmatprep.subr.bf16.mxu0 %v1512_v35  ;;  %738 = vmatpush2.bf16.msra.mxu1 %v1511_v36  ;;  %v1586_v35 = vld [vmem:[#allocation2 + $0x2d4] ss:$8 sps:$4 sm:$0xff]   ;;  %v1584_v36 = vld [vmem:[#allocation2 + $0x2d0] ss:$8 sps:$4 sm:$0xff]  }
  0x41   :  { %739 = vmatprep.subr.bf16.mxu1 %v1515_v37  ;;  %v1589_v37 = vld [vmem:[#allocation2 + $0x2c4] ss:$8 sps:$4 sm:$0xff]  }
  0x43   :  { %699 = vmatpush2.bf16.msra.mxu0 %v1514_v38  ;;  %v1587_v38 = vld [vmem:[#allocation2 + $0x2c0] ss:$8 sps:$4 sm:$0xff]  }
  0x44   :  { %700 = vmatprep.subr.bf16.mxu0 %v1518_v39  ;;  %740 = vmatpush2.bf16.msra.mxu1 %v1517_v40  ;;  %v1592_v39 = vld [vmem:[#allocation2 + $0x2b4] ss:$8 sps:$4 sm:$0xff]   ;;  %v1590_v40 = vld [vmem:[#allocation2 + $0x2b0] ss:$8 sps:$4 sm:$0xff]  }
  0x45   :  { %741 = vmatprep.subr.bf16.mxu1 %v1521_v41  ;;  %v1595_v41 = vld [vmem:[#allocation2 + $0x2a4] ss:$8 sps:$4 sm:$0xff]  }
  0x47   :  { %701 = vmatpush2.bf16.msra.mxu0 %v1520_v42  ;;  %v1593_v42 = vld [vmem:[#allocation2 + $0x2a0] ss:$8 sps:$4 sm:$0xff]  }
  0x48   :  { %702 = vmatprep.subr.bf16.mxu0 %v1524_v43  ;;  %742 = vmatpush2.bf16.msra.mxu1 %v1523_v44  ;;  %v1598_v43 = vld [vmem:[#allocation2 + $0x294] ss:$8 sps:$4 sm:$0xff]   ;;  %v1596_v44 = vld [vmem:[#allocation2 + $0x290] ss:$8 sps:$4 sm:$0xff]  }
  0x49   :  { %743 = vmatprep.subr.bf16.mxu1 %v1527_v45  ;;  %v1604_v45 = vld [vmem:[#allocation2 + $0x284] ss:$8 sps:$4 sm:$0xff]  }
  0x4b   :  { %703 = vmatpush2.bf16.msra.mxu0 %v1526_v47  ;;  %v66_v47 = vld [vmem:[%s1856_s0 + $0x20] sm:$0xff] }
  0x4c   :  { %704 = vmatprep.subr.bf16.mxu0 %v1530_v49  ;;  %744 = vmatpush2.bf16.msra.mxu1 %v1529_v51  ;;  %v73_v48 = vpack.c.bf16 %v66_v47, %v66_v47  ;;  %v1605_v49 = vld [vmem:[#allocation5 + $0x78] sm:$0xff]   ;;  %v1607_v51 = vld [vmem:[#allocation5 + $0x70] sm:$0xff]  }
  0x4d   :  { %745 = vmatprep.subr.bf16.mxu1 %v1533_v53  ;;  %v1609_v53 = vld [vmem:[#allocation5 + $0x68] sm:$0xff]  }
  0x4f   :  { %705 = vmatpush2.bf16.msra.mxu0 %v1532_v54  ;;  %v1610_v54 = vld [vmem:[#allocation5 + $0x28] sm:$0xff]  }
  0x50   :  { %706 = vmatprep.subr.bf16.mxu0 %v1536_v55  ;;  %746 = vmatpush2.bf16.msra.mxu1 %v1535_v56  ;;  %v1611_v55 = vld [vmem:[#allocation5 + $0x60] sm:$0xff]  }
  0x51   :  { %747 = vmatprep.subr.bf16.mxu1 %v1539_v57  ;;  %v1612_v56 = vld [vmem:[#allocation5 + $0x20] sm:$0xff]   ;;  %v1613_v57 = vld [vmem:[#allocation5 + $0x58] sm:$0xff]  }
  0x53   :  { %707 = vmatpush2.bf16.msra.mxu0 %v1538_v58  ;;  %v1614_v58 = vld [vmem:[#allocation5 + $0x18] sm:$0xff]  }
  0x54   :  { %708 = vmatprep.subr.bf16.mxu0 %v1542_v59  ;;  %748 = vmatpush2.bf16.msra.mxu1 %v1541_v60  ;;  %v1615_v59 = vld [vmem:[#allocation5 + $0x50] sm:$0xff]  }
  0x55   :  { %749 = vmatprep.subr.bf16.mxu1 %v1545_v61  ;;  %v1616_v60 = vld [vmem:[#allocation5 + $0x10] sm:$0xff]   ;;  %v1617_v61 = vld [vmem:[#allocation5 + $0x48] sm:$0xff]  }
  0x57   :  { %709 = vmatpush2.bf16.msra.mxu0 %v1544_v62  ;;  %v1618_v62 = vld [vmem:[#allocation5 + $0x8] sm:$0xff]  }
  0x58   :  { %710 = vmatprep.subr.bf16.mxu0 %v1548_v63  ;;  %750 = vmatpush2.bf16.msra.mxu1 %v1547_v0  ;;  %v1619_v63 = vld [vmem:[#allocation5 + $0x40] sm:$0xff]  }
  0x59   :  { %751 = vmatprep.subr.bf16.mxu1 %v1551_v2  ;;  %v1620_v0 = vld [vmem:[#allocation5] sm:$0xff]  }
  0x5b   :  { %711 = vmatpush2.bf16.msra.mxu0 %v1550_v1  ;;  %v1710_v1 = vmov 0.0  }
  0x5c   :  { %762 = vmatprep.subr.bf16.mxu0 %v1556_v5  ;;  %752 = vmatpush2.bf16.msra.mxu1 %v1553_v3 }
  0x5d   :  { %817 = vmatprep.subr.bf16.mxu1 %v1601_v12 }
  0x5e   :  { %713 = vmatmul.mubr.bf16.vlgmr.msra.gmra.mxu0 %v69_v7 }
  0x5f   :  { %763 = vmatpush1.bf16.msra.mxu0 %v1554_v8  ;;  %754 = vmatmul.mubr.bf16.vlgmr.msra.gmra.mxu1 %v71_v10 }
  0x60   :  { %764 = vmatprep.subr.bf16.mxu0 %v1559_v9  ;;  %818 = vmatpush1.bf16.msra.mxu1 %v1599_v11 }
  0x61   :  { %835 = vmatprep.mubr.bf16.mxu1 %v1709_v19  ;;  %794 = vmatprep.mubr.bf16.mxu0 %v74_v17  ;;  %v174_v17 = vld [vmem:[%s1858_s2] sm:$0x3] }
  0x62   :  { %1380 = vmatprep.subr.bf16.mxu1 %v1605_v49 }
  0x63   :  { %765 = vmatpush1.bf16.msra.mxu0 %v1557_v13 }
  0x64   :  { %766 = vmatprep.subr.bf16.mxu0 %v1562_v14  ;;  %v176_v14 = vlaneseq }
  0x66   :  { %v177_v15 = vshrl.u32 %v176_v14, 7 }
  0x67   :  { %767 = vmatpush1.bf16.msra.mxu0 %v1560_v18  ;;  %1347 = vmatmul.mubr.msk.bf16.vlgmr.msra.gmra.mxu1 %vm676_vm0, %v75_v21 }
  0x68   :  { %768 = vmatprep.subr.bf16.mxu0 %v1565_v20  ;;  %1381 = vmatpush3.bf16.msra.mxu1 %v1606_v50  ;;  %v178_v16 = vsub.s32 0, %v177_v15  ;;  %v182_v18 = vsub.s32 1, %v177_v15 }
  0x69   :  { %1382 = vmatprep.subr.bf16.mxu1 %v1607_v51 }
  0x6a   :  { %v179_v19 = vrot.slane %v174_v17, %v178_v16  ;;  %v183_v20 = vrot.slane %v174_v17, %v182_v18 }
  0x6b   :  { %769 = vmatpush1.bf16.msra.mxu0 %v1563_v22 }
  0x6c   :  { %770 = vmatprep.subr.bf16.mxu0 %v1568_v23  ;;  %1383 = vmatpush3.bf16.msra.mxu1 %v1608_v52 }
  0x6d   :  { %1384 = vmatprep.subr.bf16.mxu1 %v1609_v53 }
  0x6f   :  { %771 = vmatpush1.bf16.msra.mxu0 %v1566_v24 }
  0x70   :  { %772 = vmatprep.subr.bf16.mxu0 %v1571_v25  ;;  %1385 = vmatpush3.bf16.msra.mxu1 %v1610_v54 }
  0x71   :  { %1386 = vmatprep.subr.bf16.mxu1 %v1611_v55 }
  0x73   :  { %773 = vmatpush1.bf16.msra.mxu0 %v1569_v26 }
  0x74   :  { %774 = vmatprep.subr.bf16.mxu0 %v1574_v27  ;;  %1387 = vmatpush3.bf16.msra.mxu1 %v1612_v56  ;;  %v1631_v56 = vld [vmem:[%s1863_s7 + $0x8] sm:$0xff]  }
  0x75   :  { %1388 = vmatprep.subr.bf16.mxu1 %v1613_v57  ;;  %v1632_v57 = vld [vmem:[%s1863_s7] sm:$0xff]  }
  0x77   :  { %775 = vmatpush1.bf16.msra.mxu0 %v1572_v28 }
  0x78   :  { %776 = vmatprep.subr.bf16.mxu0 %v1577_v29  ;;  %1389 = vmatpush3.bf16.msra.mxu1 %v1614_v58  ;;  %v1365_v58 = vld [vmem:[%s1862_s6] ss:$0 sm:$0xff]  ;;  %s1712_s6 = smov [#allocation7]  }
  0x79   :  { %1390 = vmatprep.subr.bf16.mxu1 %v1615_v59 }
  0x7b   :  { %777 = vmatpush1.bf16.msra.mxu0 %v1575_v30 }
  0x7c   :  { %778 = vmatprep.subr.bf16.mxu0 %v1580_v31  ;;  %1391 = vmatpush3.bf16.msra.mxu1 %v1616_v60 }
  0x7d   :  { %1392 = vmatprep.subr.bf16.mxu1 %v1617_v61 }
  0x7f   :  { %779 = vmatpush2.bf16.msra.mxu0 %v1578_v32 }
  0x80   :  { %780 = vmatprep.subr.bf16.mxu0 %v1583_v33  ;;  %1393 = vmatpush3.bf16.msra.mxu1 %v1618_v62 }
  0x81   :  { %1394 = vmatprep.subr.bf16.mxu1 %v1619_v63 }
  0x83   :  { %781 = vmatpush2.bf16.msra.mxu0 %v1581_v34 }
  0x84   :  { %782 = vmatprep.subr.bf16.mxu0 %v1586_v35  ;;  %1395 = vmatpush3.bf16.msra.mxu1 %v1620_v0 }
  0x85   :  { %1416 = vmatprep.subr.bf16.mxu1 %v1710_v1 }
  0x87   :  { %783 = vmatpush2.bf16.msra.mxu0 %v1584_v36  ;;  %v1621_v36 = vld [vmem:[%s1861_s5 + $0x38] sm:$0xff]  }
  0x88   :  { %784 = vmatprep.subr.bf16.mxu0 %v1589_v37 }
  0x8b   :  { %785 = vmatpush2.bf16.msra.mxu0 %v1587_v38  ;;  %v1622_v38 = vld [vmem:[%s1861_s5 + $0x30] sm:$0xff]  }
  0x8c   :  { %786 = vmatprep.subr.bf16.mxu0 %v1592_v39  ;;  %v1623_v39 = vld [vmem:[%s1861_s5 + $0x28] sm:$0xff]  }
  0x8f   :  { %787 = vmatpush2.bf16.msra.mxu0 %v1590_v40  ;;  %v1624_v40 = vld [vmem:[%s1861_s5 + $0x20] sm:$0xff]  }
  0x90   :  { %788 = vmatprep.subr.bf16.mxu0 %v1595_v41  ;;  %v1625_v41 = vld [vmem:[%s1861_s5 + $0x18] sm:$0xff]  }
  0x93   :  { %789 = vmatpush2.bf16.msra.mxu0 %v1593_v42  ;;  %v1626_v42 = vld [vmem:[%s1861_s5 + $0x10] sm:$0xff]  }
  0x94   :  { %790 = vmatprep.subr.bf16.mxu0 %v1598_v43  ;;  %v1627_v43 = vld [vmem:[%s1861_s5 + $0x8] sm:$0xff]  }
  0x97   :  { %791 = vmatpush2.bf16.msra.mxu0 %v1596_v44  ;;  %v1628_v44 = vld [vmem:[%s1861_s5] sm:$0xff]  }
  0x98   :  { %792 = vmatprep.subr.bf16.mxu0 %v1604_v45  ;;  %v1629_v45 = vld [vmem:[%s1863_s7 + $0x18] sm:$0xff]  }
  0x9b   :  { %793 = vmatpush2.bf16.msra.mxu0 %v1602_v46  ;;  %v1630_v46 = vld [vmem:[%s1863_s7 + $0x10] sm:$0xff]   ;;  %s1239_s7 = sshll.u32 %s1712_s6, 4  ;;  %s1240_s7 = int_to_ptr.vmem [resolvable:$true] %s1239_s7 }
  0x9c   :  { %1436 = vmatprep.subr.bf16.mxu0 %v1710_v1  ;;  %p1682_p11 = scmp.lt.s32.totalorder %s1240_s7, %s1240_s7 }
  0x9e   :  { %795 = vmatmul.mubr.bf16.vlgmr.msra.gmra.mxu0 %v73_v48  ;;  %v1348_v48 = vld [vmem:[%s1860_s4] ss:$0 sm:$0xff] }
  0x9f   :  { %1444 = vmatprep.mubr.msk.bf16.mxu0 %vm1711_vm1, %v1710_v1  ;;  %1437 = vmatpush3.bf16.msra.mxu0 %v1629_v45 }
  0xa0   :  { %1438 = vmatprep.subr.bf16.mxu0 %v1710_v1 }
  0xa3   :  { %1439 = vmatpush3.bf16.msra.mxu0 %v1630_v46 }
  0xa4   :  { %1440 = vmatprep.subr.bf16.mxu0 %v1710_v1 }
  0xa7   :  { %1441 = vmatpush3.bf16.msra.mxu0 %v1631_v56 }
  0xa8   :  { %1442 = vmatprep.subr.bf16.mxu0 %v1710_v1 }
  0xab   :  { %1443 = vmatpush3.bf16.msra.mxu0 %v1632_v57 }
 0x11e   :  { %v714_v2 = vpop.f32.mrf.mxu0 }
 0x11f   :  { %v755_v4 = vpop.f32.mrf.mxu1  ;;  %v715_v21 = vadd.f32 %v714_v2, %v179_v19 }
 0x120   :  { %v716_v3 = vpop.f32.mrf.mxu0 }
 0x121   :  { %v757_v6 = vpop.f32.mrf.mxu1  ;;  %v717_v22 = vadd.f32 %v716_v3, %v183_v20  ;;  %v756_v23 = vadd.f32 %v755_v4, %v715_v21 }
 0x122   :  { %v718_v5 = vpop.f32.mrf.mxu0 }
 0x123   :  { %v759_v8 = vpop.f32.mrf.mxu1  ;;  %v758_v25 = vadd.f32 %v757_v6, %v717_v22 }
 0x124   :  { %v719_v7 = vpop.f32.mrf.mxu0 }
 0x125   :  { %v760_v9 = vpop.f32.mrf.mxu1 }
 0x127   :  { %v837_v10 = vpop.f32.mrf.mxu1 }
 0x129   :  { %v839_v11 = vpop.f32.mrf.mxu1 }
 0x12b   :  { %v841_v12 = vpop.f32.mrf.mxu1 }
 0x12d   :  { %v842_v13 = vpop.f32.mrf.mxu1 }
 0x15e   :  { %v796_v24 = vpop.f32.mrf.mxu0 }
 0x15f   :  { %v797_v26 = vadd.f32 %v796_v24, %v756_v23 }
 0x160   :  { %v798_v27 = vpop.f32.mrf.mxu0 }
 0x161   :  { %v838_v28 = vadd.f32 %v837_v10, %v797_v26  ;;  %v799_v29 = vadd.f32 %v798_v27, %v758_v25 }
 0x162   :  { %v800_v30 = vpop.f32.mrf.mxu0 }
 0x163   :  { %v840_v31 = vadd.f32 %v839_v11, %v799_v29  ;;  %v844_v32 = vmax.f32 %v838_v28, 0.0 }
 0x164   :  { %v801_v33 = vpop.f32.mrf.mxu0 }
 0x165   :  { %v845_v34 = vmax.f32 %v840_v31, 0.0  ;;  %v846_v37 = vpack.c.bf16 %v844_v32, %v844_v32 }
 0x167   :  { %v847_v35 = vpack.c.bf16 %v845_v34, %v845_v34 }
 0x169   :  { %1015 = vmatprep.mubr.bf16.mxu1 %v847_v35 }
 0x16a   :  { %1016 = vmatmul.mubr.bf16.vlgmr.msra.gmra.mxu1 %v846_v37 }
 0x16b   :  { %1417 = vmatpush3.bf16.msra.mxu1 %v1621_v36  ;;  %1432 = vmatprep.mubr.msk.bf16.mxu1 %vm1711_vm1, %v1710_v1 }
 0x16c   :  { %1418 = vmatprep.subr.bf16.mxu1 %v1710_v1 }
 0x16f   :  { %1419 = vmatpush3.bf16.msra.mxu1 %v1622_v38 }
 0x170   :  { %1420 = vmatprep.subr.bf16.mxu1 %v1710_v1 }
 0x173   :  { %1421 = vmatpush3.bf16.msra.mxu1 %v1623_v39 }
 0x174   :  { %1422 = vmatprep.subr.bf16.mxu1 %v1710_v1 }
 0x177   :  { %1423 = vmatpush3.bf16.msra.mxu1 %v1624_v40 }
 0x178   :  { %1424 = vmatprep.subr.bf16.mxu1 %v1710_v1 }
 0x17b   :  { %1425 = vmatpush3.bf16.msra.mxu1 %v1625_v41 }
 0x17c   :  { %1426 = vmatprep.subr.bf16.mxu1 %v1710_v1 }
 0x17f   :  { %1427 = vmatpush3.bf16.msra.mxu1 %v1626_v42 }
 0x180   :  { %1428 = vmatprep.subr.bf16.mxu1 %v1710_v1 }
 0x183   :  { %1429 = vmatpush3.bf16.msra.mxu1 %v1627_v43 }
 0x184   :  { %1430 = vmatprep.subr.bf16.mxu1 %v1710_v1  ;;  %v1374_v1 = vld [vmem:[%s1864_s8] ss:$0 sm:$0xff]  ;;  %s1677_s8 = scalar_lea.vmem %s1240_s7, 128 }
 0x185   :  { %p1678_p10 = scmp.ne.s32.totalorder %s1240_s7, %s1677_s8  ;;  %p1683_p12 = scmp.lt.s32.totalorder %s1677_s8, %s1677_s8 }
 0x187   :  { %1431 = vmatpush3.bf16.msra.mxu1 %v1628_v44  ;;  %p1684_p13 = por %p1683_p12, %p1682_p11 }
 0x189   :  { %p1685_p0 = pnand %p1684_p13, %p1678_p10 }
 0x22a   :  { %v1396_v47 = vpop.f32.mrf.mxu1 }
 0x22c   :  { %v1397_v49 = vpop.f32.mrf.mxu1 }
 0x22d   :  { %v1398_v50 = vadd.f32 %v1397_v49, %v1396_v47 }
 0x22e   :  { %v1399_v51 = vpop.f32.mrf.mxu1 }
 0x22f   :  { %v1018_v52 = vadd.f32 %v1398_v50, %v1348_v48 }
 0x230   :  { %v1400_v53 = vpop.f32.mrf.mxu1 }
 0x231   :  { %v1023_v54 = vmax.f32 %v1018_v52, 0.0 }
 0x233   :  { %v1024_v55 = vpack.c.bf16 %v1023_v54, %v1023_v54 }
 0x235   :  { %1433 = vmatmul.mubr.bf16.vlgmr.msra.gmra.mxu1 %v1024_v55 }
 0x2f5   :  { %v1130_v59 = vpop.f32.mrf.mxu1 }
 0x2f6   :  { %v1131_v60 = vadd.f32 %v1365_v58, %v1130_v59 }
 0x2f7   :  { %v1434_v61 = vpop.f32.mrf.mxu1 }
 0x2f8   :  { %v1136_v62 = vmax.f32 %v1131_v60, 0.0 }
 0x2f9   :  { %v1133_v63 = vpop.f32.mrf.mxu1 }
 0x2fa   :  { %v1137_v0 = vpack.c.bf16 %v1136_v62, %v1136_v62 }
 0x2fb   :  { %v1435_v2 = vpop.f32.mrf.mxu1 }
 0x2fc   :  { %1445 = vmatmul.mubr.msk.bf16.vlgmr.msra.gmra.mxu0 %vm1177_vm2, %v1137_v0 }
 0x3bc   :  { %v1215_v3 = vpop.f32.mrf.mxu0 }
 0x3bd   :  { %v1216_v4 = vadd.f32 %v1374_v1, %v1215_v3 }
 0x3be   :  { %v1446_v5 = vpop.f32.mrf.mxu0 }
 0x3bf   :  { %1221 = vmax.xlane.f32.xlu0 %v1216_v4 }
 0x3c0   :  { %v1218_v6 = vpop.f32.mrf.mxu0 }
 0x3c2   :  { %v1447_v7 = vpop.f32.mrf.mxu0 }
 0x448   :  { %v1222_v8 = vpop.xlane.xlu0 %1221 }
 0x449   :  { %v1223_v9 = vsub.f32 %v1216_v4, %v1222_v8 }
 0x44b   :  { %v1224_v10 = vmul.f32 1.442695, %v1223_v9 }
 0x44d   :  { %1633 = vpow2.f32 %v1224_v10 }
 0x45a   :  { %v1634_v11 = vpop.eup %1633 }
 0x45b   :  { %1226 = vadd.xlane.f32.xlu0 %v1634_v11 }
 0x4e4   :  { %v1227_v12 = vpop.xlane.xlu0 %1226 }
 0x4e5   :  { %1635 = vlog2.f32 %v1227_v12 }
 0x4f2   :  { %v1636_v13 = vpop.eup %1635 }
 0x4f3   :  { %v1229_v14 = vmul.f32 0.6931472, %v1636_v13 }
 0x4f5   :  { %v1230_v15 = vsub.f32 %v1223_v9, %v1229_v14 }
 0x4f7   :  { %1232 = vst.msk [vmem:[#allocation7] sm:$0xff] %vm1231_vm3, %v1230_v15 }
 0x4f8   :  { %1688 = shalt.err (!%p1685_p0)
}
 0x4f9   :  { %1242 = dma.vmem_to_hbm [thread:$0]  %s1240_s7, 128, %s1865_s9, [#allocation4]  }
 0x4fa   :  { %1701 = dma.done.wait [#allocation4], 128  }
 0x4fb   :  { %1702 = vsyncadd [#allocation4], 4294967168 }
 0x4fc   :  { %1246 = vsyncpa [#allocation3], 1 }
 0x4fd   :  { %1247 = vsyncpa [#allocation6], 1 }
 0x4fe   :  { %1248 = vsyncpa [#allocation4], 1 }

</bundles_post_ra>
